<compile_context>
chip_gen: v5e
topology: v5e:2x2
jax: 0.10.0
libtpu: 0.0.40
codegen_flags: <defaults>
</compile_context>

<pallas_src>
import jax
import jax.numpy as jnp
from jax.experimental import pallas as pl
from jax.experimental.pallas import tpu as pltpu

LANE = 128


def _broadcast_kernel(src_ref, out_ref):
    # src_ref: (rows, 128) lane-dense constant tile (same block every step)
    # out_ref: (TB, rows, 128) slab covering TB batch rows
    out_ref[...] = jnp.broadcast_to(src_ref[...][None], out_ref.shape)


def _pick_batch_tile(batch, row_bytes, per_buffer_budget=16 << 20):
    """Largest divisor of `batch` whose output tile fits a per-buffer budget.

    Pallas double-buffers the output, so a 16 MiB per-buffer cap keeps total
    scratch well under v7x's ~32 MiB scoped VMEM default (64 MiB physical)
    while still collapsing small batches to a single grid step.
    """
    cap = max(1, per_buffer_budget // max(row_bytes, 1))
    tb = min(batch, cap)
    while batch % tb != 0:
        tb -= 1
    # v7x megacore: for a *large* output, keep >=2 parallel grid steps so both
    # TensorCores issue output DMAs; tiny outputs stay collapsed (overhead wins).
    total_bytes = batch * row_bytes
    if batch > 1 and batch // tb == 1 and total_bytes >= (1 << 20):
        tb = batch // 2
        while batch % tb != 0:
            tb -= 1
    return tb


def constant_input_forward(const_param, batch, first_k_oup=None, out_dtype=None):
    """const_param: (1, C, H, W).  Returns (batch, C_k, H, W), matching
    ConstantInput.forward(batch) (with optional first_k_oup channel slice)."""
    _, c, h, w = const_param.shape
    if first_k_oup is not None:
        assert first_k_oup <= c
        const_param = const_param[:, :first_k_oup]
        c = first_k_oup
    if out_dtype is not None:
        const_param = const_param.astype(out_dtype)
    dtype = const_param.dtype

    m = c * h * w
    # Pad only up to a multiple of LANE (128).  The sublane block dim (`rows`)
    # equals the full array dim, so the (TB, rows, 128) block is legal even if
    # rows % 8 != 0, and in the common cases (m already a multiple of 128) we
    # skip both the padded writes and the post-kernel slice entirely.
    mp = pl.cdiv(m, LANE) * LANE
    rows = mp // LANE
    flat = const_param.reshape(m)
    if mp != m:
        flat = jnp.pad(flat, (0, mp - m))
    src = flat.reshape(rows, LANE)

    row_bytes = rows * LANE * jnp.dtype(dtype).itemsize
    tb = _pick_batch_tile(batch, row_bytes)
    grid = (batch // tb,)

    out = pl.pallas_call(
        _broadcast_kernel,
        out_shape=jax.ShapeDtypeStruct((batch, rows, LANE), dtype),
        grid=grid,
        in_specs=[pl.BlockSpec((rows, LANE), lambda b: (0, 0))],
        out_specs=pl.BlockSpec((tb, rows, LANE), lambda b: (b, 0, 0)),
        compiler_params=pltpu.CompilerParams(
            dimension_semantics=("parallel",)),
    )(src)

    if mp != m:
        out = out.reshape(batch, mp)[:, :m]
    return out.reshape(batch, c, h, w)


if __name__ == "__main__":
    # Canonical anycost-gan ConstantInput: channel=512, size=4; batch=2.
    key = jax.random.PRNGKey(0)
    channel, size, batch = 512, 4, 2
    const_param = jax.random.normal(key, (1, channel, size, size), dtype=jnp.float32)
    ref = jnp.broadcast_to(const_param, (batch, channel, size, size))

    # default path (first_k_oup not set) -- m = 8192 (lane-multiple, no pad),
    # batch collapses to a single grid step.
    out = jax.block_until_ready(constant_input_forward(const_param, batch))
    assert out.shape == (batch, channel, size, size)
    assert out.dtype == jnp.float32
    assert bool(jnp.all(out == ref))

    # first_k_oup path, lane-multiple (k*16 = 1536): no padding, no post-slice.
    k = 96
    out_k = jax.block_until_ready(
        constant_input_forward(const_param, batch, first_k_oup=k))
    assert out_k.shape == (batch, k, size, size)
    assert bool(jnp.all(out_k == ref[:, :k]))

    # first_k_oup path that exercises the padding branch (k*16 = 112 -> pad to 128).
    k2 = 7
    out_k2 = jax.block_until_ready(
        constant_input_forward(const_param, batch, first_k_oup=k2))
    assert out_k2.shape == (batch, k2, size, size)
    assert bool(jnp.all(out_k2 == ref[:, :k2]))

    # bf16 emission path (halves HBM write traffic for bf16 consumers).
    out_bf16 = jax.block_until_ready(
        constant_input_forward(const_param, batch, out_dtype=jnp.bfloat16))
    assert out_bf16.dtype == jnp.bfloat16
    assert bool(jnp.all(out_bf16 == ref.astype(jnp.bfloat16)))

    print("KERNEL_OK")
</pallas_src>

<mosaic_0001>
module attributes {stable_mosaic.version = 11 : i64} {
  func.func @_broadcast_kernel(%arg0: i32, %arg1: memref<64x128xf32, #tpu.memory_space<vmem>>, %arg2: memref<2x64x128xf32, #tpu.memory_space<vmem>>) attributes {dimension_semantics = [#tpu.dimension_semantics<parallel>], iteration_bounds = array<i64: 1>, scalar_prefetch = 0 : i64, scratch_operands = 0 : i64, tpu.core_type = #tpu.core_type<tc>, window_params = [{pipeline_mode = #tpu.pipeline_mode<synchronous>, transform_indices = @transform_0, window_bounds = array<i64: 64, 128>}, {transform_indices = @transform_1, window_bounds = array<i64: 2, 64, 128>}]} {
    %c0 = arith.constant 0 : index
    %c0_0 = arith.constant 0 : index
    %0 = vector.load %arg1[%c0, %c0_0] : memref<64x128xf32, #tpu.memory_space<vmem>>, vector<64x128xf32>
    %1 = vector.shape_cast %0 : vector<64x128xf32> to vector<1x64x128xf32>
    %2 = vector.shape_cast %1 : vector<1x64x128xf32> to vector<1x64x128xf32>
    %3 = vector.broadcast %2 : vector<1x64x128xf32> to vector<2x64x128xf32>
    %c0_1 = arith.constant 0 : index
    %c0_2 = arith.constant 0 : index
    %c0_3 = arith.constant 0 : index
    %4 = vector.load %arg2[%c0_1, %c0_2, %c0_3] : memref<2x64x128xf32, #tpu.memory_space<vmem>>, vector<2x64x128xf32>
    tpu.vector_store %arg2[%c0_1, %c0_2, %c0_3], %3 {strides = array<i32>} : memref<2x64x128xf32, #tpu.memory_space<vmem>>, vector<2x64x128xf32>,
    return
  }
  func.func @transform_0(%arg0: i32) -> (i32, i32) {
    %c0_i32 = arith.constant 0 : i32
    %c0_i32_0 = arith.constant 0 : i32
    %c0_i32_1 = arith.constant 0 : i32
    return %c0_i32, %c0_i32_0 : i32, i32
  }
  func.func @transform_1(%arg0: i32) -> (i32, i32, i32) {
    %c0_i32 = arith.constant 0 : i32
    %c0_i32_0 = arith.constant 0 : i32
    %c0_i32_1 = arith.constant 0 : i32
    return %arg0, %c0_i32, %c0_i32_0 : i32, i32, i32
  }
}

</mosaic_0001>

<bundles_post_ra>
// kernel: tpu_custom_call.1
= control target key start
LH: loop header
LB: loop body
LE: loop exit
PB: predicated region body
PF: predicated region fallthrough
CT: control target
= control target key end

     0   :  { %6 = vsyncpa [#allocation3], 0  ;;  %s150_s0 = inlined_call_operand.hbm [shape: f32[64,128], index: 0, kind: input, shape index: {}]   ;;  %s151_s1 = inlined_call_operand.hbm [shape: f32[2,64,128], index: 1, kind: output, shape index: {}]  }
   0x1   :  { %7 = vsyncpa [#allocation4], 0  ;;  %s12_s8 = sshll.u32 %s150_s0, 4  ;;  %s124_s9 = smov [#allocation2]   ;;  %s13_s8 = int_to_ptr.hbm [resolvable:$true] %s12_s8 }
   0x2   :  { %s14_s10 = sshll.u32 %s124_s9, 4  ;;  %s125_s11 = smov 128   ;;  %s15_s10 = int_to_ptr.vmem [resolvable:$true] %s14_s10 }
   0x3   :  { %s126_s12 = smov 8  }
   0x4   :  { %20 = dma.hbm_to_vmem [thread:$0]  %s13_s8, 1024, %s15_s10, [#allocation3], %s125_s11, %s125_s11, %s126_s12  }
   0x5   :  { %120 = dma.done.wait [#allocation3], 1024  }
   0x6   :  { %121 = vsyncadd [#allocation3], 4294966272  ;;  %v25_v0 = vld [vmem:[#allocation2] sm:$0xff]  ;;  %v26_v1 = vld [vmem:[#allocation2 + $0x8] sm:$0xff]  ;;  %s127_s0 = smov [#allocation5]   ;;  %s55_s16 = sshll.u32 %s151_s1, 4  ;;  %s56_s16 = int_to_ptr.hbm [resolvable:$true] %s55_s16 }
   0x7   :  { %33 = vst [vmem:[#allocation5] sm:$0xff] %v25_v0  ;;  %v27_v2 = vld [vmem:[#allocation2 + $0x10] sm:$0xff]  ;;  %v28_v3 = vld [vmem:[#allocation2 + $0x18] sm:$0xff]  ;;  %v29_v4 = vld [vmem:[#allocation2 + $0x20] sm:$0xff]  ;;  %s53_s13 = sshll.u32 %s127_s0, 4  ;;  %s54_s13 = int_to_ptr.vmem [resolvable:$true] %s53_s13 }
   0x8   :  { %41 = vst [vmem:[#allocation5 + $0x40] sm:$0xff] %v25_v0  ;;  %v30_v5 = vld [vmem:[#allocation2 + $0x28] sm:$0xff]  ;;  %v31_v6 = vld [vmem:[#allocation2 + $0x30] sm:$0xff]  ;;  %v32_v7 = vld [vmem:[#allocation2 + $0x38] sm:$0xff] }
   0x9   :  { %34 = vst [vmem:[#allocation5 + $0x8] sm:$0xff] %v26_v1 }
   0xa   :  { %42 = vst [vmem:[#allocation5 + $0x48] sm:$0xff] %v26_v1 }
   0xb   :  { %35 = vst [vmem:[#allocation5 + $0x10] sm:$0xff] %v27_v2 }
   0xc   :  { %43 = vst [vmem:[#allocation5 + $0x50] sm:$0xff] %v27_v2 }
   0xd   :  { %36 = vst [vmem:[#allocation5 + $0x18] sm:$0xff] %v28_v3 }
   0xe   :  { %44 = vst [vmem:[#allocation5 + $0x58] sm:$0xff] %v28_v3 }
   0xf   :  { %37 = vst [vmem:[#allocation5 + $0x20] sm:$0xff] %v29_v4 }
  0x10   :  { %45 = vst [vmem:[#allocation5 + $0x60] sm:$0xff] %v29_v4 }
  0x11   :  { %38 = vst [vmem:[#allocation5 + $0x28] sm:$0xff] %v30_v5 }
  0x12   :  { %46 = vst [vmem:[#allocation5 + $0x68] sm:$0xff] %v30_v5 }
  0x13   :  { %39 = vst [vmem:[#allocation5 + $0x30] sm:$0xff] %v31_v6 }
  0x14   :  { %47 = vst [vmem:[#allocation5 + $0x70] sm:$0xff] %v31_v6 }
  0x15   :  { %40 = vst [vmem:[#allocation5 + $0x38] sm:$0xff] %v32_v7 }
  0x16   :  { %48 = vst [vmem:[#allocation5 + $0x78] sm:$0xff] %v32_v7 }
  0x17   :  { %61 = dma.vmem_to_hbm [thread:$0]  %s54_s13, 2048, %s56_s16, [#allocation4], %s125_s11, %s125_s11, %s126_s12  }
  0x18   :  { %122 = dma.done.wait [#allocation4], 2048  }
  0x19   :  { %123 = vsyncadd [#allocation4], 4294965248 }
  0x1a   :  { %66 = vsyncpa [#allocation3], 1 }
  0x1b   :  { %67 = vsyncpa [#allocation4], 1 }

</bundles_post_ra>
